<compile_context>
chip_gen: v6e
topology: v6e:2x2x1
jax: 0.10.0
libtpu: 0.0.40
codegen_flags: <defaults>
</compile_context>

<pallas_src>
import functools

import jax
import jax.numpy as jnp
from jax.experimental import pallas as pl
from jax.experimental.pallas import tpu as pltpu


def _channel_attention_kernel(x_ref, w1_ref, w2_ref, o_ref, sum_sc, max_sc,
                              *, hw_real, tile_hw, num_tiles):
    t = pl.program_id(1)
    last = num_tiles - 1
    last_valid = hw_real - last * tile_hw          # compile-time constant
    ragged = (last_valid != tile_hw)               # compile-time constant

    @pl.when(t == 0)
    def _init():
        sum_sc[...] = jnp.zeros_like(sum_sc)
        max_sc[...] = jnp.full_like(max_sc, -jnp.inf)

    def _accum(x_sum, x_max):
        # x_sum: f32 [C, tile_hw]; x_max: input dtype [C, tile_hw]
        sum_sc[...] += jnp.sum(x_sum, axis=-1, keepdims=True)
        max_sc[...] = jnp.maximum(
            max_sc[...],
            jnp.max(x_max, axis=-1, keepdims=True).astype(jnp.float32))

    if not ragged:
        # Every tile is fully in-bounds: bare sum/max stream, no mask at all.
        x = x_ref[...]
        _accum(x.astype(jnp.float32), x)
    else:
        @pl.when(t < last)
        def _full_tiles():                         # never padded -> no mask
            x = x_ref[...]
            _accum(x.astype(jnp.float32), x)

        @pl.when(t == last)
        def _ragged_tile():                        # mask OOB lanes: 0 / -inf
            x = x_ref[...]
            lane = jax.lax.broadcasted_iota(jnp.int32, x.shape, 1)
            valid = lane < last_valid
            _accum(jnp.where(valid, x.astype(jnp.float32), 0.0),
                   jnp.where(valid, x, -jnp.inf))

    @pl.when(t == last)
    def _epilogue():
        avg = sum_sc[...] * (1.0 / hw_real)        # [C, 1]
        mx = max_sc[...]                           # [C, 1]
        # Stack both pooled vectors on the lane axis -> one matmul pair serves
        # both fc branches (instead of two serial tiny matmul pairs).
        col = jax.lax.broadcasted_iota(jnp.int32, (avg.shape[0], 2), 1)
        p = jnp.where(col == 0, avg, mx)           # [C, 2]
        w1 = w1_ref[...]                           # [hidden, C]
        w2 = w2_ref[...]                           # [C, hidden]
        h = jnp.maximum(jnp.dot(w1, p, preferred_element_type=jnp.float32), 0.0)
        y = jnp.dot(w2, h, preferred_element_type=jnp.float32)   # [C, 2]
        att = jax.nn.sigmoid(jnp.sum(y, axis=1, keepdims=True))  # [C, 1]
        o_ref[...] = att.astype(o_ref.dtype)


def _vmem_plan():
    """(per_input_buffer_bytes, vmem_limit_bytes) for the local TPU generation."""
    try:
        vmem_cap = pltpu.get_tpu_info().vmem_capacity_bytes
    except Exception:
        vmem_cap = 64 * 1024 * 1024                # conservative: v7x-class
    if vmem_cap <= 64 * 1024 * 1024:               # v7x: 64 MiB physical VMEM
        return 12 * 1024 * 1024, 44 * 1024 * 1024
    return 20 * 1024 * 1024, 56 * 1024 * 1024      # v5e/v6e: 128 MiB physical


def _select_tile(hw, C, itemsize, per_buffer_bytes):
    """Pick an HW tile that needs no host-side padding.

    Either the full hw extent (full-dim blocks are exempt from the (8,128)
    divisibility rule) or a 128-multiple; if no fitting 128-multiple divides
    hw exactly, the ragged last tile is masked in-kernel instead.
    """
    if C * hw * itemsize <= per_buffer_bytes:
        return hw, 1
    max_tile = max(128, (per_buffer_bytes // (C * itemsize)) // 128 * 128)
    tile = None
    cand = max_tile
    while cand >= 128:                             # prefer an exact divisor
        if hw % cand == 0:
            tile = cand
            break
        cand -= 128
    if tile is None:
        tile = max_tile                            # ragged last tile (masked)
    return tile, pl.cdiv(hw, tile)


def channel_attention(x, w1, w2, *, tile_hw=None):
    """ChannelAttention forward.

    x:  [N, C, H, W]          (f32 or bf16; sum/fc accumulate in f32)
    w1: fc1 conv weight [hidden, C, 1, 1]   (hidden = C // 16, bias-free)
    w2: fc2 conv weight [C, hidden, 1, 1]
    returns: sigmoid attention map [N, C, 1, 1] (float32)
    """
    N, C, H, W = x.shape
    hidden = w1.shape[0]
    hw = H * W
    x_flat = x.reshape(N, C, hw)                   # layout-only reshape, no pad

    per_buffer, vmem_limit = _vmem_plan()
    if tile_hw is None:
        tile_hw, num_tiles = _select_tile(hw, C, x.dtype.itemsize, per_buffer)
    else:
        if tile_hw != hw and tile_hw % 128 != 0:
            raise ValueError("tile_hw must equal H*W or be a multiple of 128")
        num_tiles = pl.cdiv(hw, tile_hw)

    # 1x1 convs on a [N, C, 1, 1] tensor are dense matmuls; natural layouts,
    # no data transposes needed inside the kernel.
    w1m = w1.reshape(hidden, C)                    # fc1 as [hidden, C]
    w2m = w2.reshape(C, hidden)                    # fc2 as [C, hidden]

    kernel = functools.partial(_channel_attention_kernel,
                               hw_real=hw, tile_hw=tile_hw, num_tiles=num_tiles)

    # TODO(synk): for N == 1 on v7x, hoist the fc epilogue and add a parallel
    # HW-split leading grid axis so both TensorCores stream HBM.
    att = pl.pallas_call(
        kernel,
        out_shape=jax.ShapeDtypeStruct((N, C, 1), jnp.float32),
        grid=(N, num_tiles),
        in_specs=[
            pl.BlockSpec((pl.Squeezed(), C, tile_hw), lambda n, t: (n, 0, t)),
            pl.BlockSpec((hidden, C), lambda n, t: (0, 0)),
            pl.BlockSpec((C, hidden), lambda n, t: (0, 0)),
        ],
        # index_map constant over t: the output block stays resident across the
        # reduction axis; only the last-tile epilogue writes it.
        out_specs=pl.BlockSpec((pl.Squeezed(), C, 1), lambda n, t: (n, 0, 0)),
        scratch_shapes=[
            pltpu.VMEM((C, 1), jnp.float32),       # running per-channel sum
            pltpu.VMEM((C, 1), jnp.float32),       # running per-channel max
        ],
        compiler_params=pltpu.CompilerParams(
            dimension_semantics=("parallel", "arbitrary"),
            vmem_limit_bytes=vmem_limit,
        ),
    )(x_flat, w1m, w2m)

    return att.reshape(N, C, 1, 1)


def _reference(x, w1, w2):
    avg = jnp.mean(x, axis=(2, 3))                       # [N, C]
    mx = jnp.max(x, axis=(2, 3))                         # [N, C]
    w1m = w1.reshape(w1.shape[0], -1)                    # [hidden, C]
    w2m = w2.reshape(w2.shape[0], -1)                    # [C, hidden]

    def fc(p):
        return jnp.maximum(p @ w1m.T, 0.0) @ w2m.T

    return jax.nn.sigmoid(fc(avg) + fc(mx))[:, :, None, None]


if __name__ == "__main__":
    key = jax.random.PRNGKey(0)

    def run_case(case_key, N, C, H, W, tile_hw=None):
        k1, k2, k3 = jax.random.split(case_key, 3)
        hidden = C // 16
        x = jax.random.normal(k1, (N, C, H, W), dtype=jnp.float32)
        w1 = 0.1 * jax.random.normal(k2, (hidden, C, 1, 1), dtype=jnp.float32)
        w2 = 0.1 * jax.random.normal(k3, (C, hidden, 1, 1), dtype=jnp.float32)
        out = jax.block_until_ready(channel_attention(x, w1, w2, tile_hw=tile_hw))
        assert out.shape == (N, C, 1, 1)
        ref = _reference(x, w1, w2)
        assert bool(jnp.allclose(out, ref, atol=1e-3, rtol=1e-3)), (
            f"mismatch (N={N},C={C},H={H},W={W},tile={tile_hw}): "
            f"max abs err {float(jnp.max(jnp.abs(out - ref)))}")
        return out

    k_a, k_b, k_c = jax.random.split(key, 3)
    # in_planes=64 (hidden=4): auto plan -> single full-extent tile, no mask.
    run_case(k_a, N=2, C=64, H=16, W=16)
    # in_planes=32 (hidden=2): forced 256-lane tiles over hw=576 -> 3 tiles with
    # a ragged last tile (64 valid lanes) masked in-kernel, no host padding.
    run_case(k_b, N=2, C=32, H=24, W=24, tile_hw=256)
    # in_planes=32: evenly dividing multi-tile plan (2 x 128) -> maskless
    # multi-tile accumulation path.
    run_case(k_c, N=2, C=32, H=16, W=16, tile_hw=128)

    print("KERNEL_OK")
</pallas_src>

<mosaic_0001>
module attributes {stable_mosaic.version = 11 : i64} {
  func.func @_channel_attention_kernel(%arg0: i32, %arg1: i32, %arg2: memref<1x64x256xf32, #tpu.memory_space<vmem>>, %arg3: memref<4x64xf32, #tpu.memory_space<vmem>>, %arg4: memref<64x4xf32, #tpu.memory_space<vmem>>, %arg5: memref<1x64x1xf32, #tpu.memory_space<vmem>>, %arg6: memref<64x1xf32, #tpu.memory_space<vmem>>, %arg7: memref<64x1xf32, #tpu.memory_space<vmem>>) attributes {dimension_semantics = [#tpu.dimension_semantics<parallel>, #tpu.dimension_semantics<arbitrary>], iteration_bounds = array<i64: 2, 1>, scalar_prefetch = 0 : i64, scratch_operands = 2 : i64, tpu.core_type = #tpu.core_type<tc>, window_params = [{transform_indices = @transform_0, window_bounds = array<i64: 1, 64, 256>}, {pipeline_mode = #tpu.pipeline_mode<synchronous>, transform_indices = @transform_1, window_bounds = array<i64: 4, 64>}, {pipeline_mode = #tpu.pipeline_mode<synchronous>, transform_indices = @transform_2, window_bounds = array<i64: 64, 4>}, {transform_indices = @transform_3, window_bounds = array<i64: 1, 64, 1>}]} {
    %c0_i32 = arith.constant 0 : i32
    %0 = arith.cmpi eq, %arg1, %c0_i32 : i32
    %1 = arith.extui %0 : i1 to i32
    %c0_i32_0 = arith.constant 0 : i32
    %2 = arith.cmpi ne, %1, %c0_i32_0 : i32
    scf.if %2 {
      %cst_14 = arith.constant 0.000000e+00 : f32
      %18 = vector.broadcast %cst_14 : f32 to vector<64x1xf32>
      %c0_15 = arith.constant 0 : index
      %c0_16 = arith.constant 0 : index
      %19 = vector.load %arg6[%c0_15, %c0_16] : memref<64x1xf32, #tpu.memory_space<vmem>>, vector<64x1xf32>
      tpu.vector_store %arg6[%c0_15, %c0_16], %18 {strides = array<i32>} : memref<64x1xf32, #tpu.memory_space<vmem>>, vector<64x1xf32>,
      %cst_17 = arith.constant 0xFF800000 : f32
      %20 = vector.broadcast %cst_17 : f32 to vector<64x1xf32>
      %c0_18 = arith.constant 0 : index
      %c0_19 = arith.constant 0 : index
      %21 = vector.load %arg7[%c0_18, %c0_19] : memref<64x1xf32, #tpu.memory_space<vmem>>, vector<64x1xf32>
      tpu.vector_store %arg7[%c0_18, %c0_19], %20 {strides = array<i32>} : memref<64x1xf32, #tpu.memory_space<vmem>>, vector<64x1xf32>,
    } else {
    }
    %c0 = arith.constant 0 : index
    %c0_1 = arith.constant 0 : index
    %c0_2 = arith.constant 0 : index
    %3 = vector.load %arg2[%c0, %c0_1, %c0_2] : memref<1x64x256xf32, #tpu.memory_space<vmem>>, vector<1x64x256xf32>
    %4 = vector.shape_cast %3 : vector<1x64x256xf32> to vector<64x256xf32>
    %c0_3 = arith.constant 0 : index
    %c0_4 = arith.constant 0 : index
    %5 = vector.load %arg6[%c0_3, %c0_4] : memref<64x1xf32, #tpu.memory_space<vmem>>, vector<64x1xf32>
    %cst = arith.constant dense<0.000000e+00> : vector<64xf32>
    %6 = vector.multi_reduction <add>, %4, %cst [1] : vector<64x256xf32> to vector<64xf32>
    %7 = vector.shape_cast %6 : vector<64xf32> to vector<64x1xf32>
    %8 = arith.addf %5, %7 : vector<64x1xf32>
    %c0_5 = arith.constant 0 : index
    %c0_6 = arith.constant 0 : index
    %9 = vector.load %arg6[%c0_5, %c0_6] : memref<64x1xf32, #tpu.memory_space<vmem>>, vector<64x1xf32>
    tpu.vector_store %arg6[%c0_5, %c0_6], %8 {strides = array<i32>} : memref<64x1xf32, #tpu.memory_space<vmem>>, vector<64x1xf32>,
    %c0_7 = arith.constant 0 : index
    %c0_8 = arith.constant 0 : index
    %10 = vector.load %arg7[%c0_7, %c0_8] : memref<64x1xf32, #tpu.memory_space<vmem>>, vector<64x1xf32>
    %cst_9 = arith.constant dense<0xFF800000> : vector<64xf32>
    %11 = vector.multi_reduction <maximumf>, %4, %cst_9 [1] : vector<64x256xf32> to vector<64xf32>
    %12 = vector.shape_cast %11 : vector<64xf32> to vector<64x1xf32>
    %13 = arith.maximumf %10, %12 : vector<64x1xf32>
    %c0_10 = arith.constant 0 : index
    %c0_11 = arith.constant 0 : index
    %14 = vector.load %arg7[%c0_10, %c0_11] : memref<64x1xf32, #tpu.memory_space<vmem>>, vector<64x1xf32>
    tpu.vector_store %arg7[%c0_10, %c0_11], %13 {strides = array<i32>} : memref<64x1xf32, #tpu.memory_space<vmem>>, vector<64x1xf32>,
    %c0_i32_12 = arith.constant 0 : i32
    %15 = arith.cmpi eq, %arg1, %c0_i32_12 : i32
    %16 = arith.extui %15 : i1 to i32
    %c0_i32_13 = arith.constant 0 : i32
    %17 = arith.cmpi ne, %16, %c0_i32_13 : i32
    scf.if %17 {
      %c0_14 = arith.constant 0 : index
      %c0_15 = arith.constant 0 : index
      %18 = vector.load %arg6[%c0_14, %c0_15] : memref<64x1xf32, #tpu.memory_space<vmem>>, vector<64x1xf32>
      %cst_16 = arith.constant 3.906250e-03 : f32
      %19 = vector.broadcast %cst_16 : f32 to vector<64x1xf32>
      %20 = arith.mulf %18, %19 : vector<64x1xf32>
      %c0_17 = arith.constant 0 : index
      %c0_18 = arith.constant 0 : index
      %21 = vector.load %arg7[%c0_17, %c0_18] : memref<64x1xf32, #tpu.memory_space<vmem>>, vector<64x1xf32>
      %22 = tpu.iota {dimensions = array<i32: 1>} : vector<64x2xi32>
      %c0_i32_19 = arith.constant 0 : i32
      %23 = vector.broadcast %c0_i32_19 : i32 to vector<64x2xi32>
      %24 = arith.cmpi eq, %22, %23 : vector<64x2xi32>
      %25 = vector.shape_cast %20 : vector<64x1xf32> to vector<64x1xf32>
      %26 = vector.broadcast %25 : vector<64x1xf32> to vector<64x2xf32>
      %27 = vector.shape_cast %21 : vector<64x1xf32> to vector<64x1xf32>
      %28 = vector.broadcast %27 : vector<64x1xf32> to vector<64x2xf32>
      %29 = arith.select %24, %26, %28 : vector<64x2xi1>, vector<64x2xf32>
      %c0_20 = arith.constant 0 : index
      %c0_21 = arith.constant 0 : index
      %30 = vector.load %arg3[%c0_20, %c0_21] : memref<4x64xf32, #tpu.memory_space<vmem>>, vector<4x64xf32>
      %c0_22 = arith.constant 0 : index
      %c0_23 = arith.constant 0 : index
      %31 = vector.load %arg4[%c0_22, %c0_23] : memref<64x4xf32, #tpu.memory_space<vmem>>, vector<64x4xf32>
      %cst_24 = arith.constant dense<0.000000e+00> : vector<4x2xf32>
      %32 = tpu.matmul %30, %29, %cst_24 {dimension_numbers = #tpu.dot_dimension_numbers<[1], [0], [0], [1], [0, 0, 1, 1], [], []>} : vector<4x64xf32>, vector<64x2xf32>, vector<4x2xf32> -> vector<4x2xf32>
      %cst_25 = arith.constant 0.000000e+00 : f32
      %33 = vector.broadcast %cst_25 : f32 to vector<4x2xf32>
      %34 = arith.maximumf %32, %33 : vector<4x2xf32>
      %cst_26 = arith.constant dense<0.000000e+00> : vector<64x2xf32>
      %35 = tpu.matmul %31, %34, %cst_26 {dimension_numbers = #tpu.dot_dimension_numbers<[1], [0], [0], [1], [0, 0, 1, 1], [], []>} : vector<64x4xf32>, vector<4x2xf32>, vector<64x2xf32> -> vector<64x2xf32>
      %cst_27 = arith.constant dense<0.000000e+00> : vector<64xf32>
      %36 = vector.multi_reduction <add>, %35, %cst_27 [1] : vector<64x2xf32> to vector<64xf32>
      %37 = vector.shape_cast %36 : vector<64xf32> to vector<64x1xf32>
      %38 = arith.negf %37 : vector<64x1xf32>
      %39 = math.exp %38 : vector<64x1xf32>
      %cst_28 = arith.constant 1.000000e+00 : f32
      %40 = vector.broadcast %cst_28 : f32 to vector<64x1xf32>
      %41 = arith.addf %40, %39 : vector<64x1xf32>
      %42 = arith.divf %40, %41 : vector<64x1xf32>
      %c0_29 = arith.constant 0 : index
      %c0_30 = arith.constant 0 : index
      %c0_31 = arith.constant 0 : index
      %43 = vector.load %arg5[%c0_29, %c0_30, %c0_31] : memref<1x64x1xf32, #tpu.memory_space<vmem>>, vector<1x64x1xf32>
      %44 = vector.shape_cast %43 : vector<1x64x1xf32> to vector<64x1xf32>
      %45 = vector.shape_cast %42 : vector<64x1xf32> to vector<1x64x1xf32>
      tpu.vector_store %arg5[%c0_29, %c0_30, %c0_31], %45 {strides = array<i32>} : memref<1x64x1xf32, #tpu.memory_space<vmem>>, vector<1x64x1xf32>,
    } else {
    }
    return
  }
  func.func @transform_0(%arg0: i32, %arg1: i32) -> (i32, i32, i32) {
    %c0_i32 = arith.constant 0 : i32
    %c0_i32_0 = arith.constant 0 : i32
    return %arg0, %c0_i32, %arg1 : i32, i32, i32
  }
  func.func @transform_1(%arg0: i32, %arg1: i32) -> (i32, i32) {
    %c0_i32 = arith.constant 0 : i32
    %c0_i32_0 = arith.constant 0 : i32
    %c0_i32_1 = arith.constant 0 : i32
    return %c0_i32, %c0_i32_0 : i32, i32
  }
  func.func @transform_2(%arg0: i32, %arg1: i32) -> (i32, i32) {
    %c0_i32 = arith.constant 0 : i32
    %c0_i32_0 = arith.constant 0 : i32
    %c0_i32_1 = arith.constant 0 : i32
    return %c0_i32, %c0_i32_0 : i32, i32
  }
  func.func @transform_3(%arg0: i32, %arg1: i32) -> (i32, i32, i32) {
    %c0_i32 = arith.constant 0 : i32
    %c0_i32_0 = arith.constant 0 : i32
    %c0_i32_1 = arith.constant 0 : i32
    return %arg0, %c0_i32, %c0_i32_0 : i32, i32, i32
  }
}

</mosaic_0001>

<bundles_post_ra>
// kernel: tpu_custom_call.1
= control target key start
LH: loop header
LB: loop body
LE: loop exit
PB: predicated region body
PF: predicated region fallthrough
CT: control target
= control target key end

     0   :  { %8 = vsyncpa [#allocation5], 0  ;;  %s1345_s0 = inlined_call_operand.hbm [shape: f32[2,64,256], index: 0, kind: input, shape index: {}]   ;;  %s1346_s1 = inlined_call_operand.vmem [shape: f32[4,64], index: 1, kind: input, shape index: {}]   ;;  %s1347_s2 = inlined_call_operand.vmem [shape: f32[64,4], index: 2, kind: input, shape index: {}]   ;;  %s1348_s3 = inlined_call_operand.vmem [shape: f32[2,64,1], index: 3, kind: output, shape index: {}]  }
   0x1   :  { %10 = vsyncpa [#allocation5 + $0x1], 0  ;;  %s1123_s12 = smov 0   ;;  %s1125_s13 = smov 0  }
   0x2   :  { %s1127_s14 = smov 0   ;;  %s1129_s15 = smov 0  }
   0x3   :  { %s1131_s16 = smov 0   ;;  %s1133_s17 = smov 0  }
   0x4 LB: > { %s837_s18 = sadd.s32 4294967295, %s1094_s17   ;;  %s28_s19 = sadd.s32 1, %s1090_s16  ;;  %s1094_s17 = sphi %s1133_s17, %s16_s17   ;;  %s1090_s16 = sphi %s1131_s16, %s1356_s16   ;;  %s1086_s15 = sphi %s1129_s15, %s1355_s15   ;;  %s1082_s14 = sphi %s1127_s14, %s1354_s14   ;;  %s1078_s13 = sphi %s1125_s13, %s1353_s13   ;;  %s1074_s12 = sphi %s1123_s12, %s1352_s12  }
   0x5   : > { %p30_p0 = scmp.ge.s32.totalorder %s28_s19, 2  ;;  %s37_s20 = sadd.s32 1, %s1082_s14 }
   0x6   : > { %p44_p1 = scmp.ne.s32.totalorder %s1082_s14, %s1078_s13  ;;  %p45_p2 = scmp.eq.s32.totalorder %s1094_s17, 0 }
   0x7   : > { %s1358_s19 = smov (%p30_p0, %s28_s19), 0  ;;  %p50_p4 = scmp.ne.s32.totalorder %s1078_s13, %s1074_s12 }
   0x8   : > { %p1159_p3 = por %p45_p2, %p44_p1  ;;  %s32_s22 = ssub.s32 %s1090_s16, %s1358_s19 }
   0x9   : > { %p51_p5 = scmp.eq.s32.totalorder %s837_s18, 0  ;;  %p35_p6 = scmp.eq.s32.totalorder %s32_s22, 0 }
   0xa   : > { %p927_p8 = scmp.lt.s32.totalorder %s1094_s17, 2  ;;  %s148_s25 = sand.u32 1, %s1082_s14  }
   0xb   : > { %p1166_p7 = por %p51_p5, %p50_p4  ;;  %s868_s26 = sshll.u32 %s1090_s16, 11 }
   0xc   : > { %s1172_s24 = scalar_select %p35_p6, %s1082_s14, %s37_s20  }
   0xd   : > { %s841_s27 = sshll.u32 %s148_s25, 7  ;;  %s160_s30 = scalar_lea.hbm %s1345_s0, %s868_s26 }
   0xe   : > { %s152_s4 = scalar_lea.vmem [#allocation4], %s841_s27  ;;  %p1181_p9 = pnand %p927_p8, %p1159_p3 }
   0xf   : > { %s161_s5 = sshll.u32 %s152_s4, 4  ;;  %s149_s7 = scalar_lea.sflag [#allocation5], %s148_s25  ;;  %s162_s5 = int_to_ptr.vmem [resolvable:$true] %s161_s5 }
  0x10   : > { %p1018_p10 = pneg %p1181_p9  ;;  %s1029_s8 = scalar_lea.vmem %s162_s5, 2048 }
  0x11   : > { %p1030_p11 = scmp.ne.s32.totalorder %s162_s5, %s1029_s8  ;;  %s1096_s9 = smov [#allocation4]  }
  0x12   : > { %s1034_s10 = sshll.u32 %s1096_s9, 4  ;;  %s1035_s10 = int_to_ptr.vmem [resolvable:$false] %s1034_s10 }
  0x13   : > { %p1032_p12 = pnand %p1030_p11, %p1018_p10  ;;  %s1036_s11 = scalar_lea.vmem %s1035_s10, 4096 }
  0x14   : > { %p1037_p0 = scmp.lt.s32.totalorder %s162_s5, %s1035_s10  ;;  %p1038_p1 = scmp.lt.s32.totalorder %s1036_s11, %s1029_s8 }
  0x15   : > { %p1033_p13 = pneg %p1032_p12 }
  0x16   : > { %p1039_p2 = por %p1038_p1, %p1037_p0 }
  0x18   : > { %p1040_p3 = pnand %p1039_p2, %p1033_p13 }
  0x1a   : > { %1043 = shalt.err (!%p1040_p3)
}
  0x1b   : > { %s1097_s12 = smov 256   ;;  %s1098_s18 = smov 16  }
  0x1c   : > { %926 = dma.hbm_to_vmem [thread:$0]  (!%p1181_p9), %s160_s30, 2048, %s162_s5, %s149_s7, %s1097_s12, %s1097_s12, %s1098_s18  }
  0x1d   : > { %p844_p4 = scmp.ge.s32.totalorder %s1094_s17, 1  ;;  %p169_p5 = scmp.lt.s32.totalorder %s1094_s17, 3 }
  0x1f   : > { %p170_p6 = pnand %p844_p4, %p169_p5 }
  0x20   : > { %s175_s20 = sand.u32 (!%p170_p6), 1, %s1078_s13  }
  0x21   : > { %173 = sbr.rel (%p170_p6) target bundleno = 937 (0x3a9), region = 32  ;;  %s845_s21 = sshll.u32 (!%p170_p6), %s175_s20, 7 }
  0x22   : > { %s176_s22 = scalar_lea.sflag (!%p170_p6), [#allocation5], %s175_s20  ;;  %s1192_s25 = scalar_lea.vmem (!%p170_p6), [#allocation4], %s845_s21 }
  0x26   : > { %1069 = dma.done.wait (%p1166_p7), %s176_s22, 2048  }
  0x27   : > { %1071 = vsyncadd (%p1166_p7), %s176_s22, 4294965248  ;;  %vm212_vm0 = vcmask 7168   ;;  %v1099_v0 = vmov 0.0   ;;  %v243_v1 = vld [vmem:[%s1192_s25 + $0x70] sm:$0xff]  ;;  %v244_v2 = vld [vmem:[%s1192_s25 + $0x78] sm:$0xff]  ;;  %v1100_v15 = vmov -inf  }
  0x28   : > { %220 = vst.msk [vmem:[#allocation2 + $0x38] sm:$0xff] %vm212_vm0, %v1099_v0  ;;  %213 = vst.msk [vmem:[#allocation2] sm:$0xff] %vm212_vm0, %v1099_v0  ;;  %888 = vmatprep.subr.mxu0 %v1099_v0  ;;  %v241_v3 = vld [vmem:[%s1192_s25 + $0x60] sm:$0xff]  ;;  %v274_v4 = vadd.f32 %v244_v2, %v243_v1  ;;  %v323_v5 = vmax.f32 %v243_v1, %v244_v2  ;;  %v242_v6 = vld [vmem:[%s1192_s25 + $0x68] sm:$0xff]  ;;  %v1101_v32 = vmov 0   ;;  %vm1102_vm1 = vmmov 0  }
  0x29   : > { %214 = vst.msk [vmem:[#allocation2 + $0x8] sm:$0xff] %vm212_vm0, %v1099_v0  ;;  %215 = vst.msk [vmem:[#allocation2 + $0x10] sm:$0xff] %vm212_vm0, %v1099_v0  ;;  %v239_v7 = vld [vmem:[%s1192_s25 + $0x50] sm:$0xff]  ;;  %v240_v8 = vld [vmem:[%s1192_s25 + $0x58] sm:$0xff]  ;;  %v271_v9 = vadd.f32 %v242_v6, %v241_v3  ;;  %v320_v13 = vmax.f32 %v241_v3, %v242_v6  ;;  %983 = vset.pattern.permute.xlu0 %v1101_v32  ;;  %982 = vset.pattern.permute.xlu1 %v1101_v32  ;;  %vm469_vm3 = vcmask 523264   ;;  %vm544_vm4 = vcmask 31744  }
  0x2a   : > { %216 = vst.msk [vmem:[#allocation2 + $0x18] sm:$0xff] %vm212_vm0, %v1099_v0  ;;  %217 = vst.msk [vmem:[#allocation2 + $0x20] sm:$0xff] %vm212_vm0, %v1099_v0  ;;  %275 = vadd.xlane.f32.xlu0 %v274_v4  ;;  %324 = vmax.xlane.f32.xlu1 %v323_v5  ;;  %v268_v10 = vadd.f32 %v240_v8, %v239_v7  ;;  %v237_v11 = vld [vmem:[%s1192_s25 + $0x40] sm:$0xff]  ;;  %v238_v12 = vld [vmem:[%s1192_s25 + $0x48] sm:$0xff]  ;;  %v317_v18 = vmax.f32 %v239_v7, %v240_v8  ;;  %vm569_vm5 = vcmask 1043456   ;;  %vm678_vm6 = vcmask 15360  }
  0x2b   : > { %218 = vst.msk [vmem:[#allocation2 + $0x28] sm:$0xff] %vm212_vm0, %v1099_v0  ;;  %219 = vst.msk [vmem:[#allocation2 + $0x30] sm:$0xff] %vm212_vm0, %v1099_v0  ;;  %v265_v14 = vadd.f32 %v238_v12, %v237_v11  ;;  %v235_v16 = vld [vmem:[%s1192_s25 + $0x30] sm:$0xff]  ;;  %v236_v17 = vld [vmem:[%s1192_s25 + $0x38] sm:$0xff]  ;;  %v314_v22 = vmax.f32 %v237_v11, %v238_v12  ;;  %904 = vmatprep.mubr.msk.f32.mxu0 %vm1102_vm1, %v1099_v0  ;;  %p203_p7 = scmp.lt.s32.totalorder %s1086_s15, 1 }
  0x2c   : > { %228 = vst.msk [vmem:[#allocation3 + $0x38] sm:$0xff] %vm212_vm0, %v1100_v15  ;;  %221 = vst.msk [vmem:[#allocation3] sm:$0xff] %vm212_vm0, %v1100_v15  ;;  %v262_v19 = vadd.f32 %v236_v17, %v235_v16  ;;  %v233_v20 = vld [vmem:[%s1192_s25 + $0x20] sm:$0xff]  ;;  %v234_v21 = vld [vmem:[%s1192_s25 + $0x28] sm:$0xff]  ;;  %v311_v26 = vmax.f32 %v235_v16, %v236_v17 }
  0x2d   : > { %222 = vst.msk [vmem:[#allocation3 + $0x8] sm:$0xff] %vm212_vm0, %v1100_v15  ;;  %223 = vst.msk [vmem:[#allocation3 + $0x10] sm:$0xff] %vm212_vm0, %v1100_v15  ;;  %v259_v23 = vadd.f32 %v234_v21, %v233_v20  ;;  %v231_v24 = vld [vmem:[%s1192_s25 + $0x10] sm:$0xff]  ;;  %v232_v25 = vld [vmem:[%s1192_s25 + $0x18] sm:$0xff]  ;;  %v308_v30 = vmax.f32 %v233_v20, %v234_v21  ;;  %s1360_s15 = smov (!%p203_p7, %s1086_s15), 1 }
  0x2e   : > { %272 = vadd.xlane.f32.xlu0 %v271_v9  ;;  %269 = vadd.xlane.f32.xlu1 %v268_v10  ;;  %224 = vst.msk [vmem:[#allocation3 + $0x18] sm:$0xff] %vm212_vm0, %v1100_v15  ;;  %225 = vst.msk [vmem:[#allocation3 + $0x20] sm:$0xff] %vm212_vm0, %v1100_v15  ;;  %v256_v27 = vadd.f32 %v232_v25, %v231_v24  ;;  %v229_v28 = vld [vmem:[%s1192_s25] sm:$0xff]  ;;  %v230_v29 = vld [vmem:[%s1192_s25 + $0x8] sm:$0xff]  ;;  %v305_v33 = vmax.f32 %v231_v24, %v232_v25  ;;  %s869_s22 = sshll.u32 %s1360_s15, 6 }
  0x2f   : > { %226 = vst.msk [vmem:[#allocation3 + $0x28] sm:$0xff] %vm212_vm0, %v1100_v15  ;;  %227 = vst.msk [vmem:[#allocation3 + $0x30] sm:$0xff] %vm212_vm0, %v1100_v15  ;;  %v253_v31 = vadd.f32 %v230_v29, %v229_v28  ;;  %v302_v34 = vmax.f32 %v229_v28, %v230_v29  ;;  %v252_v35 = vld [vmem:[#allocation2 + $0x38] sm:$0xff]  ;;  %s207_s26 = scalar_lea.vmem %s1348_s3, %s869_s22 }
  0x30   : > { %v247_v63 = vld [vmem:[#allocation2 + $0x10] sm:$0xff]  ;;  %v246_v7 = vld [vmem:[#allocation2 + $0x8] sm:$0xff] }
  0x31   : > { %v249_v48 = vld [vmem:[#allocation2 + $0x20] sm:$0xff]  ;;  %v248_v56 = vld [vmem:[#allocation2 + $0x18] sm:$0xff] }
  0x32   : > { %321 = vmax.xlane.f32.xlu0 %v320_v13  ;;  %266 = vadd.xlane.f32.xlu1 %v265_v14  ;;  %v251_v41 = vld [vmem:[#allocation2 + $0x30] sm:$0xff]  ;;  %v250_v42 = vld [vmem:[#allocation2 + $0x28] sm:$0xff]  ;;  %v245_v14 = vld [vmem:[#allocation2] sm:$0xff] }
  0x33   : > { %v301_v36 = vld [vmem:[#allocation3 + $0x38] sm:$0xff] }
  0x34   : > { %v296_v13 = vld [vmem:[#allocation3 + $0x10] sm:$0xff] }
  0x35   : > { %v298_v62 = vld [vmem:[#allocation3 + $0x20] sm:$0xff]  ;;  %v297_v6 = vld [vmem:[#allocation3 + $0x18] sm:$0xff] }
  0x36   : > { %318 = vmax.xlane.f32.xlu0 %v317_v18  ;;  %263 = vadd.xlane.f32.xlu1 %v262_v19  ;;  %v300_v47 = vld [vmem:[#allocation3 + $0x30] sm:$0xff]  ;;  %v299_v52 = vld [vmem:[#allocation3 + $0x28] sm:$0xff] }
  0x37   : > { %v295_v18 = vld [vmem:[#allocation3 + $0x8] sm:$0xff] }
  0x3a   : > { %315 = vmax.xlane.f32.xlu0 %v314_v22  ;;  %260 = vadd.xlane.f32.xlu1 %v259_v23  ;;  %v294_v22 = vld [vmem:[#allocation3] sm:$0xff] }
  0x3e   : > { %312 = vmax.xlane.f32.xlu0 %v311_v26  ;;  %257 = vadd.xlane.f32.xlu1 %v256_v27 }
  0x42   : > { %309 = vmax.xlane.f32.xlu0 %v308_v30  ;;  %254 = vadd.xlane.f32.xlu1 %v253_v31 }
  0x46   : > { %306 = vmax.xlane.f32.xlu0 %v305_v33  ;;  %303 = vmax.xlane.f32.xlu1 %v302_v34 }
  0xb3   : > { %v276_v37 = vpop.xlane.xlu0 %275  ;;  %v325_v38 = vpop.xlane.xlu1 %324 }
  0xb4   : > { %v284_v39 = vadd.f32 %v276_v37, %v252_v35  ;;  %v333_v40 = vmax.f32 %v301_v36, %v325_v38 }
  0xb6   : > { %293 = vst.msk [vmem:[#allocation2 + $0x38] sm:$0xff] %vm212_vm0, %v284_v39  ;;  %341 = vst.msk [vmem:[#allocation3 + $0x38] sm:$0xff] %vm212_vm0, %v333_v40 }
  0xb7   : > { %v273_v43 = vpop.xlane.xlu0 %272  ;;  %v270_v44 = vpop.xlane.xlu1 %269 }
  0xb8   : > { %v283_v45 = vadd.f32 %v273_v43, %v251_v41  ;;  %v282_v46 = vadd.f32 %v270_v44, %v250_v42  ;;  %v369_v44 = vlaneseq }
  0xba   : > { %292 = vst.msk [vmem:[#allocation2 + $0x30] sm:$0xff] %vm212_vm0, %v283_v45  ;;  %291 = vst.msk [vmem:[#allocation2 + $0x28] sm:$0xff] %vm212_vm0, %v282_v46  ;;  %v370_v45 = vand.u32 127, %v369_v44 }
  0xbb   : > { %v322_v49 = vpop.xlane.xlu0 %321  ;;  %v267_v50 = vpop.xlane.xlu1 %266 }
  0xbc   : > { %v332_v51 = vmax.f32 %v300_v47, %v322_v49  ;;  %v281_v53 = vadd.f32 %v267_v50, %v249_v48  ;;  %vm371_vm2 = vcmp.eq.s32.totalorder %v370_v45, 0 }
  0xbd   : > { %v368_v54 = vld [vmem:[#allocation3 + $0x38] sm:$0xff] }
  0xbe   : > { %v352_v55 = vld [vmem:[#allocation2 + $0x38] sm:$0xff]  ;;  %340 = vst.msk [vmem:[#allocation3 + $0x30] sm:$0xff] %vm212_vm0, %v332_v51  ;;  %290 = vst.msk [vmem:[#allocation2 + $0x20] sm:$0xff] %vm212_vm0, %v281_v53  ;;  %449 = vperm.xlu1 %982, %v368_v54  }
  0xbf   : > { %v360_v57 = vmul.f32 0.00390625, %v352_v55  ;;  %v319_v58 = vpop.xlane.xlu0 %318  ;;  %v264_v59 = vpop.xlane.xlu1 %263 }
  0xc0   : > { %v331_v60 = vmax.f32 %v299_v52, %v319_v58  ;;  %v280_v61 = vadd.f32 %v264_v59, %v248_v56 }
  0xc1   : > { %409 = vperm.xlu0 %983, %v360_v57   ;;  %v351_v21 = vld [vmem:[#allocation2 + $0x30] sm:$0xff]  ;;  %v350_v29 = vld [vmem:[#allocation2 + $0x28] sm:$0xff] }
  0xc2   : > { %339 = vst.msk [vmem:[#allocation3 + $0x28] sm:$0xff] %vm212_vm0, %v331_v60  ;;  %289 = vst.msk [vmem:[#allocation2 + $0x18] sm:$0xff] %vm212_vm0, %v280_v61  ;;  %v359_v26 = vmul.f32 0.00390625, %v351_v21  ;;  %v358_v30 = vmul.f32 0.00390625, %v350_v29 }
  0xc3   : > { %v316_v1 = vpop.xlane.xlu0 %315  ;;  %v261_v2 = vpop.xlane.xlu1 %260 }
  0xc4   : > { %v330_v3 = vmax.f32 %v298_v62, %v316_v1  ;;  %v279_v4 = vadd.f32 %v261_v2, %v247_v63 }
  0xc5   : > { %v367_v5 = vld [vmem:[#allocation3 + $0x30] sm:$0xff]  ;;  %v349_v32 = vld [vmem:[#allocation2 + $0x20] sm:$0xff] }
  0xc6   : > { %338 = vst.msk [vmem:[#allocation3 + $0x20] sm:$0xff] %vm212_vm0, %v330_v3  ;;  %444 = vperm.xlu1 %982, %v367_v5   ;;  %288 = vst.msk [vmem:[#allocation2 + $0x10] sm:$0xff] %vm212_vm0, %v279_v4  ;;  %v357_v33 = vmul.f32 0.00390625, %v349_v32 }
  0xc7   : > { %v313_v8 = vpop.xlane.xlu0 %312  ;;  %v258_v9 = vpop.xlane.xlu1 %257 }
  0xc8   : > { %v329_v10 = vmax.f32 %v297_v6, %v313_v8  ;;  %v278_v11 = vadd.f32 %v258_v9, %v246_v7  ;;  %v460_v6 = vld [vmem:[%s1346_s1] sm:$0xf] }
  0xc9   : > { %v366_v12 = vld [vmem:[#allocation3 + $0x28] sm:$0xff]  ;;  %v348_v35 = vld [vmem:[#allocation2 + $0x18] sm:$0xff]  ;;  %v461_v8 = vld [vmem:[%s1347_s2] sm:$0xff] }
  0xca   : > { %337 = vst.msk [vmem:[#allocation3 + $0x18] sm:$0xff] %vm212_vm0, %v329_v10  ;;  %439 = vperm.xlu1 %982, %v366_v12   ;;  %287 = vst.msk [vmem:[#allocation2 + $0x8] sm:$0xff] %vm212_vm0, %v278_v11  ;;  %v356_v37 = vmul.f32 0.00390625, %v348_v35  ;;  %909 = vmatprep.mubr.msk.f32.mxu1 %vm544_vm4, %v461_v8  ;;  %v462_v11 = vld [vmem:[%s1347_s2 + $0x8] sm:$0xff]  ;;  %v463_v12 = vld [vmem:[%s1347_s2 + $0x10] sm:$0xff] }
  0xcb   : > { %v310_v15 = vpop.xlane.xlu0 %309  ;;  %v255_v16 = vpop.xlane.xlu1 %254 }
  0xcc   : > { %v328_v17 = vmax.f32 %v296_v13, %v310_v15  ;;  %v277_v19 = vadd.f32 %v255_v16, %v245_v14  ;;  %v464_v13 = vld [vmem:[%s1347_s2 + $0x18] sm:$0xff]  ;;  %v465_v14 = vld [vmem:[%s1347_s2 + $0x20] sm:$0xff]  ;;  %v466_v15 = vld [vmem:[%s1347_s2 + $0x28] sm:$0xff] }
  0xcd   : > { %v365_v20 = vld [vmem:[#allocation3 + $0x20] sm:$0xff]  ;;  %v347_v38 = vld [vmem:[#allocation2 + $0x10] sm:$0xff] }
  0xce   : > { %336 = vst.msk [vmem:[#allocation3 + $0x10] sm:$0xff] %vm212_vm0, %v328_v17  ;;  %434 = vperm.xlu1 %982, %v365_v20   ;;  %286 = vst.msk [vmem:[#allocation2] sm:$0xff] %vm212_vm0, %v277_v19  ;;  %v355_v39 = vmul.f32 0.00390625, %v347_v38  ;;  %v467_v16 = vld [vmem:[%s1347_s2 + $0x30] sm:$0xff]  ;;  %v468_v17 = vld [vmem:[%s1347_s2 + $0x38] sm:$0xff] }
  0xcf   : > { %v307_v23 = vpop.xlane.xlu0 %306  ;;  %v304_v24 = vpop.xlane.xlu1 %303 }
  0xd0   : > { %v327_v25 = vmax.f32 %v295_v18, %v307_v23  ;;  %v326_v27 = vmax.f32 %v294_v22, %v304_v24 }
  0xd1   : > { %v364_v28 = vld [vmem:[#allocation3 + $0x18] sm:$0xff]  ;;  %v346_v40 = vld [vmem:[#allocation2 + $0x8] sm:$0xff] }
  0xd2   : > { %335 = vst.msk [vmem:[#allocation3 + $0x8] sm:$0xff] %vm212_vm0, %v327_v25  ;;  %429 = vperm.xlu0 %983, %v364_v28   ;;  %404 = vperm.xlu1 %982, %v359_v26   ;;  %334 = vst.msk [vmem:[#allocation3] sm:$0xff] %vm212_vm0, %v326_v27  ;;  %v354_v41 = vmul.f32 0.00390625, %v346_v40 }
  0xd5   : > { %v363_v31 = vld [vmem:[#allocation3 + $0x10] sm:$0xff]  ;;  %v345_v42 = vld [vmem:[#allocation2] sm:$0xff] }
  0xd6   : > { %424 = vperm.xlu0 %983, %v363_v31   ;;  %399 = vperm.xlu1 %982, %v358_v30   ;;  %v353_v43 = vmul.f32 0.00390625, %v345_v42 }
  0xd9   : > { %v362_v34 = vld [vmem:[#allocation3 + $0x8] sm:$0xff]  ;;  %v361_v36 = vld [vmem:[#allocation3] sm:$0xff] }
  0xda   : > { %419 = vperm.xlu0 %983, %v362_v34   ;;  %394 = vperm.xlu1 %982, %v357_v33  }
  0xde   : > { %414 = vperm.xlu0 %983, %v361_v36   ;;  %389 = vperm.xlu1 %982, %v356_v37  }
  0xe2   : > { %384 = vperm.xlu1 %982, %v355_v39  }
  0xe6   : > { %379 = vperm.xlu1 %982, %v354_v41  }
  0xea   : > { %374 = vperm.xlu1 %982, %v353_v43  }
 0x139   : > { %v450_v46 = vpop.permute.xlu1 %449 }
 0x13c   : > { %v410_v47 = vpop.permute.xlu0 %409 }
 0x13d   : > { %v459_v48 = vsel %vm371_vm2, %v410_v47, %v450_v46 }
 0x13e   : > { %889 = vmatpush3.msra.mxu0 %v459_v48 }
 0x13f   : > { %890 = vmatprep.subr.mxu0 %v1099_v0 }
 0x141   : > { %v445_v49 = vpop.permute.xlu1 %444 }
 0x145   : > { %v440_v50 = vpop.permute.xlu1 %439 }
 0x149   : > { %v435_v51 = vpop.permute.xlu1 %434 }
 0x14d   : > { %v405_v52 = vpop.permute.xlu1 %404  ;;  %v430_v56 = vpop.permute.xlu0 %429 }
 0x14e   : > { %v458_v53 = vsel %vm371_vm2, %v405_v52, %v445_v49 }
 0x14f   : > { %891 = vmatpush3.msra.mxu0 %v458_v53 }
 0x150   : > { %892 = vmatprep.subr.mxu0 %v1099_v0 }
 0x151   : > { %v400_v54 = vpop.permute.xlu1 %399  ;;  %v425_v59 = vpop.permute.xlu0 %424 }
 0x152   : > { %v457_v55 = vsel %vm371_vm2, %v400_v54, %v440_v50 }
 0x153   : > { %893 = vmatpush3.msra.mxu0 %v457_v55 }
 0x154   : > { %894 = vmatprep.subr.mxu0 %v1099_v0 }
 0x155   : > { %v395_v57 = vpop.permute.xlu1 %394  ;;  %v420_v1 = vpop.permute.xlu0 %419 }
 0x156   : > { %v456_v58 = vsel %vm371_vm2, %v395_v57, %v435_v51 }
 0x157   : > { %895 = vmatpush3.msra.mxu0 %v456_v58 }
 0x158   : > { %896 = vmatprep.subr.mxu0 %v1099_v0 }
 0x159   : > { %v390_v60 = vpop.permute.xlu1 %389  ;;  %v415_v4 = vpop.permute.xlu0 %414 }
 0x15a   : > { %v455_v61 = vsel %vm371_vm2, %v390_v60, %v430_v56 }
 0x15b   : > { %897 = vmatpush3.msra.mxu0 %v455_v61 }
 0x15c   : > { %898 = vmatprep.subr.mxu0 %v1099_v0 }
 0x15d   : > { %v385_v62 = vpop.permute.xlu1 %384 }
 0x15e   : > { %v454_v63 = vsel %vm371_vm2, %v385_v62, %v425_v59 }
 0x15f   : > { %899 = vmatpush3.msra.mxu0 %v454_v63 }
 0x160   : > { %900 = vmatprep.subr.mxu0 %v1099_v0 }
 0x161   : > { %v380_v2 = vpop.permute.xlu1 %379 }
 0x162   : > { %v453_v3 = vsel %vm371_vm2, %v380_v2, %v420_v1 }
 0x163   : > { %901 = vmatpush3.msra.mxu0 %v453_v3 }
 0x164   : > { %902 = vmatprep.subr.mxu0 %v1099_v0 }
 0x165   : > { %v375_v5 = vpop.permute.xlu1 %374 }
 0x166   : > { %v452_v7 = vsel %vm371_vm2, %v375_v5, %v415_v4 }
 0x167   : > { %903 = vmatpush3.msra.mxu0 %v452_v7 }
 0x168   : > { %905 = vmatmul.mubr.msk.f32.vlgmr.msra.gmra.mxu0 %vm469_vm3, %v460_v6 }
 0x228   : > { %v539_v9 = vpop.f32.mrf.mxu0 }
 0x229   : > { %v543_v0 = vmax.f32 %v539_v9, 0.0 }
 0x22a   : > { %v906_v10 = vpop.f32.mrf.mxu0 }
 0x22b   : > { %907 = vmatprep.subr.msk.mxu1 %vm569_vm5, %v543_v0 }
 0x22c   : > { %908 = vmatpush3.msk.msra.mxu1 %vm569_vm5, %v543_v0 }
 0x22d   : > { %910 = vmatmul.mubr.msk.f32.vlgmr.msra.gmra.mxu1 %vm544_vm4, %v462_v11 }
 0x22e   : > { %912 = vmatprep.mubr.msk.f32.mxu1 %vm544_vm4, %v463_v12 }
 0x231   : > { %913 = vmatmul.mubr.msk.f32.gmra.mxu1 %vm544_vm4, %v464_v13 }
 0x232   : > { %915 = vmatprep.mubr.msk.f32.mxu1 %vm544_vm4, %v465_v14 }
 0x235   : > { %916 = vmatmul.mubr.msk.f32.gmra.mxu1 %vm544_vm4, %v466_v15 }
 0x236   : > { %918 = vmatprep.mubr.msk.f32.mxu1 %vm544_vm4, %v467_v16 }
 0x239   : > { %919 = vmatmul.mubr.msk.f32.gmra.mxu1 %vm544_vm4, %v468_v17 }
 0x2ed   : > { %v911_v18 = vpop.f32.mrf.mxu1 }
 0x2ee   : > { %v682_v19 = vsel %vm678_vm6, %v911_v18, 0.0 }
 0x2ef   : > { %683 = vadd.xlane.f32.xlu0 %v682_v19  ;;  %v639_v20 = vpop.f32.mrf.mxu1 }
 0x2f0   : > { %v679_v21 = vsel %vm678_vm6, %v639_v20, 0.0 }
 0x2f1   : > { %680 = vadd.xlane.f32.xlu1 %v679_v21  ;;  %v914_v22 = vpop.f32.mrf.mxu1 }
 0x2f2   : > { %v688_v24 = vsel %vm678_vm6, %v914_v22, 0.0 }
 0x2f3   : > { %v649_v23 = vpop.f32.mrf.mxu1 }
 0x2f4   : > { %v685_v25 = vsel %vm678_vm6, %v649_v23, 0.0 }
 0x2f5   : > { %689 = vadd.xlane.f32.xlu1 %v688_v24  ;;  %686 = vadd.xlane.f32.xlu0 %v685_v25  ;;  %v917_v26 = vpop.f32.mrf.mxu1 }
 0x2f6   : > { %v694_v28 = vsel %vm678_vm6, %v917_v26, 0.0 }
 0x2f7   : > { %v659_v27 = vpop.f32.mrf.mxu1 }
 0x2f8   : > { %v691_v29 = vsel %vm678_vm6, %v659_v27, 0.0 }
 0x2f9   : > { %695 = vadd.xlane.f32.xlu1 %v694_v28  ;;  %692 = vadd.xlane.f32.xlu0 %v691_v29  ;;  %v920_v30 = vpop.f32.mrf.mxu1 }
 0x2fa   : > { %v700_v32 = vsel %vm678_vm6, %v920_v30, 0.0 }
 0x2fb   : > { %v669_v31 = vpop.f32.mrf.mxu1 }
 0x2fc   : > { %v697_v33 = vsel %vm678_vm6, %v669_v31, 0.0 }
 0x2fd   : > { %701 = vadd.xlane.f32.xlu1 %v700_v32  ;;  %698 = vadd.xlane.f32.xlu0 %v697_v33 }
 0x378   : > { %v684_v34 = vpop.xlane.xlu0 %683 }
 0x379   : > { %v859_v35 = vmul.f32 -1.442695, %v684_v34 }
 0x37a   : > { %v681_v36 = vpop.xlane.xlu1 %680 }
 0x37b   : > { %984 = vpow2.f32 %v859_v35  ;;  %v858_v37 = vmul.f32 -1.442695, %v681_v36 }
 0x37d   : > { %986 = vpow2.f32 %v858_v37 }
 0x37e   : > { %v690_v38 = vpop.xlane.xlu1 %689  ;;  %v687_v39 = vpop.xlane.xlu0 %686 }
 0x37f   : > { %v861_v40 = vmul.f32 -1.442695, %v690_v38  ;;  %v860_v41 = vmul.f32 -1.442695, %v687_v39 }
 0x381   : > { %988 = vpow2.f32 %v861_v40 }
 0x382   : > { %990 = vpow2.f32 %v860_v41  ;;  %v696_v42 = vpop.xlane.xlu1 %695  ;;  %v693_v43 = vpop.xlane.xlu0 %692 }
 0x383   : > { %v863_v44 = vmul.f32 -1.442695, %v696_v42  ;;  %v862_v45 = vmul.f32 -1.442695, %v693_v43 }
 0x385   : > { %992 = vpow2.f32 %v863_v44 }
 0x386   : > { %994 = vpow2.f32 %v862_v45  ;;  %v702_v46 = vpop.xlane.xlu1 %701  ;;  %v699_v47 = vpop.xlane.xlu0 %698 }
 0x387   : > { %v865_v48 = vmul.f32 -1.442695, %v702_v46  ;;  %v864_v49 = vmul.f32 -1.442695, %v699_v47 }
 0x388   : > { %v985_v50 = vpop.eup %984 }
 0x389   : > { %v728_v51 = vadd.f32 1.0, %v985_v50  ;;  %996 = vpow2.f32 %v865_v48 }
 0x38a   : > { %v987_v52 = vpop.eup %986  ;;  %998 = vpow2.f32 %v864_v49 }
 0x38b   : > { %1000 = vrcp.f32 %v728_v51  ;;  %v727_v53 = vadd.f32 1.0, %v987_v52 }
 0x38d   : > { %1002 = vrcp.f32 %v727_v53 }
 0x38e   : > { %v989_v54 = vpop.eup %988 }
 0x38f   : > { %v991_v55 = vpop.eup %990  ;;  %v730_v56 = vadd.f32 1.0, %v989_v54 }
 0x390   : > { %v729_v57 = vadd.f32 1.0, %v991_v55 }
 0x391   : > { %1004 = vrcp.f32 %v730_v56 }
 0x392   : > { %v993_v58 = vpop.eup %992  ;;  %1006 = vrcp.f32 %v729_v57 }
 0x393   : > { %v995_v59 = vpop.eup %994  ;;  %v732_v60 = vadd.f32 1.0, %v993_v58 }
 0x394   : > { %v731_v61 = vadd.f32 1.0, %v995_v59 }
 0x395   : > { %1008 = vrcp.f32 %v732_v60 }
 0x396   : > { %v997_v62 = vpop.eup %996  ;;  %1010 = vrcp.f32 %v731_v61 }
 0x397   : > { %v999_v63 = vpop.eup %998  ;;  %v734_v1 = vadd.f32 1.0, %v997_v62 }
 0x398   : > { %v1001_v2 = vpop.eup %1000  ;;  %v733_v3 = vadd.f32 1.0, %v999_v63 }
 0x399   : > { %752 = vst.msk [vmem:[%s207_s26 + $0x8] sm:$0xff] %vm212_vm0, %v1001_v2  ;;  %1012 = vrcp.f32 %v734_v1 }
 0x39a   : > { %v1003_v4 = vpop.eup %1002  ;;  %1014 = vrcp.f32 %v733_v3 }
 0x39b   : > { %751 = vst.msk [vmem:[%s207_s26] sm:$0xff] %vm212_vm0, %v1003_v4 }
 0x39e   : > { %v1005_v5 = vpop.eup %1004 }
 0x39f   : > { %v1007_v6 = vpop.eup %1006  ;;  %754 = vst.msk [vmem:[%s207_s26 + $0x18] sm:$0xff] %vm212_vm0, %v1005_v5 }
 0x3a0   : > { %753 = vst.msk [vmem:[%s207_s26 + $0x10] sm:$0xff] %vm212_vm0, %v1007_v6 }
 0x3a2   : > { %v1009_v7 = vpop.eup %1008 }
 0x3a3   : > { %v1011_v8 = vpop.eup %1010  ;;  %756 = vst.msk [vmem:[%s207_s26 + $0x28] sm:$0xff] %vm212_vm0, %v1009_v7 }
 0x3a4   : > { %755 = vst.msk [vmem:[%s207_s26 + $0x20] sm:$0xff] %vm212_vm0, %v1011_v8 }
 0x3a6   : > { %v1013_v9 = vpop.eup %1012 }
 0x3a7   : > { %v1015_v0 = vpop.eup %1014  ;;  %758 = vst.msk [vmem:[%s207_s26 + $0x38] sm:$0xff] %vm212_vm0, %v1013_v9 }
 0x3a8   : > { %757 = vst.msk [vmem:[%s207_s26 + $0x30] sm:$0xff] %vm212_vm0, %v1015_v0 }
 0x3a9 PF: > { %s16_s17 = sadd.s32 1, %s1094_s17   ;;  %s1352_s12 = smov %s1078_s13 }
 0x3aa   : > { %p13_p8 = scmp.ge.s32.totalorder %s16_s17, 4   ;;  %s1353_s13 = smov %s1082_s14 }
 0x3ab   : > { %s1354_s14 = smov %s1172_s24  ;;  %s1355_s15 = smov %s1090_s16 }
 0x3ac   : > { %s1356_s16 = smov %s1358_s19  ;;  %15 = sbr.rel (!%p13_p8) target bundleno = 4 (0x4), region = 80 }
 0x3b1   :  { %780 = vsyncpa [#allocation5], 1 }
 0x3b2   :  { %782 = vsyncpa [#allocation5 + $0x1], 1 }

</bundles_post_ra>
